<compile_context>
chip_gen: v7x
topology: tpu7x:2x2x1
jax: 0.10.0
libtpu: 0.0.40
codegen_flags: <defaults>
</compile_context>

<pallas_src>
import functools

import jax
import jax.numpy as jnp
from jax import lax
from jax.experimental import pallas as pl
from jax.experimental.pallas import tpu as pltpu


def _mine_kernel(emb_r_ref, emb_c_ref, sq_r_ref, half_sq_c_ref, lab_r_ref,
                 lab_c_ref, ap_ref, an_ref, max_acc, min_acc, *, tk,
                 resident_cand):
    j = pl.program_id(1)

    @pl.when(j == 0)
    def _():
        max_acc[...] = jnp.full(max_acc.shape, -jnp.inf, max_acc.dtype)
        min_acc[...] = jnp.full(min_acc.shape, jnp.inf, min_acc.dtype)

    # Candidate block: either sliced out of the VMEM-resident full array
    # (sublane-dim pl.ds, 128/tk-aligned) or the streamed (tk, d) tile.
    if resident_cand:
        col = pl.multiple_of(j * tk, tk)
        emb_c = emb_c_ref[pl.ds(col, tk), :]
    else:
        emb_c = emb_c_ref[...]

    # Resident (N/tk, tk) column vectors: pick row j (sublane slice) -> (1, tk).
    half_sq_c = half_sq_c_ref[pl.ds(j, 1), :]
    lab_c = lab_c_ref[pl.ds(j, 1), :]

    # Gram tile on the MXU: contract feature dims directly (no emb.T),
    # f32 accumulation regardless of operand dtype.
    gram = lax.dot_general(
        emb_r_ref[...], emb_c,
        dimension_numbers=(((1,), (1,)), ((), ())),
        preferred_element_type=jnp.float32)                      # (tq, tk) f32

    # q = 0.5*||x_j||^2 - <x_i, x_j>;  dist^2 = 2*q + ||x_i||^2 (applied at the
    # end — max/min commute with the per-row affine map).
    q = half_sq_c - gram                                          # (tq, tk)
    same = lab_r_ref[...] == lab_c                                # (tq, tk) bool

    # Elementwise (VALU) accumulation; the XLU axis-1 reduce is deferred.
    max_acc[...] = jnp.maximum(max_acc[...], jnp.where(same, q, -jnp.inf))
    min_acc[...] = jnp.minimum(min_acc[...], jnp.where(same, jnp.inf, q))

    @pl.when(j == pl.num_programs(1) - 1)
    def _():
        sq_r = sq_r_ref[...]                                      # (tq, 1)
        ap2 = 2.0 * jnp.max(max_acc[...], axis=1, keepdims=True) + sq_r
        an2 = 2.0 * jnp.min(min_acc[...], axis=1, keepdims=True) + sq_r
        # clamp(1e-12) + sqrt commute with the mining, so applying them only
        # to the mined (tq, 1) vectors matches torch's per-element clamp/sqrt.
        ap_ref[...] = jnp.sqrt(jnp.maximum(ap2, 1e-12))
        an_ref[...] = jnp.sqrt(jnp.maximum(an2, 1e-12))


def _finalize_kernel(ap_ref, an_ref, loss_ref, prec_ref, *, margin, n):
    ap = ap_ref[...]                                              # (N, 1) f32
    an = an_ref[...]
    # MarginRankingLoss(margin) with y = 1: mean(relu(dist_ap - dist_an + margin))
    loss_ref[0, 0] = jnp.sum(jnp.maximum(ap - an + margin, 0.0)) / n
    prec_ref[0, 0] = jnp.sum((an > ap).astype(jnp.float32)) / n


def _pick_tile(n, d, itemsize, budget_bytes=40 * (1 << 20)):
    # Bigger tiles = fewer grid steps + higher per-byte reuse, bounded by a
    # conservative VMEM budget (v7x physical VMEM is only 64 MiB).
    for t in (512, 256, 128):
        est = 4 * t * max(d, 128) * itemsize + 2 * t * t * 4
        if n % t == 0 and est <= budget_bytes:
            return t
    for t in (512, 256, 128):
        if n % t == 0:
            return t
    return n


def _vmem_estimate_bytes(n, d, tq, tk, emb_itemsize, resident_cand, nj):
    pad = lambda x, m: ((x + m - 1) // m) * m
    dpad = pad(d, 128)
    rows = 2 * tq * dpad * emb_itemsize                            # emb_r x2 bufs
    cand = (2 * pad(n, 8) * dpad * emb_itemsize) if resident_cand \
        else (2 * pad(tk, 8) * dpad * emb_itemsize)                # emb_c
    scratch = 2 * tq * pad(tk, 128) * 4                            # max/min acc
    vecs = 2 * 2 * pad(nj, 8) * pad(tk, 128) * 4                   # col norms/labels
    cols = 2 * 2 * pad(tq, 8) * 128 * 4                            # row norms/labels
    outs = 2 * 2 * pad(tq, 8) * 128 * 4                            # dist_ap/an
    return rows + cand + scratch + vecs + cols + outs


def triplet_loss(emb, label, *, margin=0.3, row_tile=None, col_tile=None,
                 gram_dtype=None, resident_candidate=None):
    """Pallas equivalent of TripletLoss(margin).forward(emb, label)."""
    # TODO(synk): mid_hard=True (second-hardest positive) and the emb_ cross-set
    # path of the PyTorch module are not implemented; this covers the default
    # forward(emb, label).
    n, d = emb.shape

    # MXU operands (optionally bf16); norms/accumulation stay f32.
    emb_gram = emb if gram_dtype is None else emb.astype(gram_dtype)
    emb_bytes = jnp.dtype(emb_gram.dtype).itemsize

    tq = row_tile if row_tile is not None else _pick_tile(n, d, emb_bytes)
    tk = col_tile if col_tile is not None else _pick_tile(n, d, emb_bytes)
    assert n % tq == 0 and n % tk == 0, (n, tq, tk)
    if (tq == n or tk == n) and n > 1024:
        raise ValueError(
            "Batch size is not divisible by a supported tile (128/256/512); "
            "pad N to a multiple of 128 to avoid a full (N, N) tile in VMEM.")

    nj = n // tk

    # Wrapper-side layout plumbing (f32 norms computed once).
    emb_f32 = emb.astype(jnp.float32)
    sq = jnp.sum(emb_f32 * emb_f32, axis=1)                        # (N,)
    sq_col = sq.reshape(n, 1)                                      # ||x_i||^2
    half_sq_grid = (0.5 * sq).reshape(nj, tk)                      # 0.5*||x_j||^2
    lab_i32 = label.astype(jnp.int32)
    lab_col = lab_i32.reshape(n, 1)
    lab_grid = lab_i32.reshape(nj, tk)

    # Decide candidate residency + explicit VMEM limit.
    if resident_candidate is None:
        resident_candidate = _vmem_estimate_bytes(
            n, d, tq, tk, emb_bytes, True, nj) <= 40 * (1 << 20)
    vmem_est = _vmem_estimate_bytes(n, d, tq, tk, emb_bytes,
                                    resident_candidate, nj)
    vmem_limit = int(min(max(32 * (1 << 20), vmem_est * 5 // 4 + (4 << 20)),
                         64 * (1 << 20)))

    if resident_candidate:
        cand_spec = pl.BlockSpec((n, d), lambda i, j: (0, 0))      # resident
    else:
        cand_spec = pl.BlockSpec((tk, d), lambda i, j: (j, 0))     # streamed

    kernel = functools.partial(_mine_kernel, tk=tk,
                               resident_cand=resident_candidate)

    dist_ap, dist_an = pl.pallas_call(
        kernel,
        grid_spec=pltpu.PrefetchScalarGridSpec(
            num_scalar_prefetch=0,
            grid=(n // tq, nj),
            in_specs=[
                pl.BlockSpec((tq, d), lambda i, j: (i, 0)),        # anchor rows
                cand_spec,                                         # candidates
                pl.BlockSpec((tq, 1), lambda i, j: (i, 0)),        # ||x_i||^2
                pl.BlockSpec((nj, tk), lambda i, j: (0, 0)),       # 0.5*||x_j||^2
                pl.BlockSpec((tq, 1), lambda i, j: (i, 0)),        # labels (rows)
                pl.BlockSpec((nj, tk), lambda i, j: (0, 0)),       # labels (cols)
            ],
            out_specs=[
                pl.BlockSpec((tq, 1), lambda i, j: (i, 0)),        # dist_ap
                pl.BlockSpec((tq, 1), lambda i, j: (i, 0)),        # dist_an
            ],
            scratch_shapes=[
                pltpu.VMEM((tq, tk), jnp.float32),                 # running max
                pltpu.VMEM((tq, tk), jnp.float32),                 # running min
            ],
        ),
        out_shape=[
            jax.ShapeDtypeStruct((n, 1), jnp.float32),
            jax.ShapeDtypeStruct((n, 1), jnp.float32),
        ],
        compiler_params=pltpu.CompilerParams(
            dimension_semantics=("parallel", "arbitrary"),
            vmem_limit_bytes=vmem_limit),
    )(emb_gram, emb_gram, sq_col, half_sq_grid, lab_col, lab_grid)

    loss, prec = pl.pallas_call(
        functools.partial(_finalize_kernel, margin=float(margin), n=float(n)),
        in_specs=[
            pl.BlockSpec(memory_space=pltpu.MemorySpace.VMEM),
            pl.BlockSpec(memory_space=pltpu.MemorySpace.VMEM),
        ],
        out_specs=[
            pl.BlockSpec(memory_space=pltpu.MemorySpace.SMEM),
            pl.BlockSpec(memory_space=pltpu.MemorySpace.SMEM),
        ],
        out_shape=[
            jax.ShapeDtypeStruct((1, 1), jnp.float32),
            jax.ShapeDtypeStruct((1, 1), jnp.float32),
        ],
    )(dist_ap, dist_an)
    return loss[0, 0], prec[0, 0]


def _reference(emb, label, margin):
    # Pure-JAX mirror of the PyTorch semantics (additive sentinels on sqrt'd
    # distances), used only for the correctness check.
    emb = emb.astype(jnp.float32)
    sq = jnp.sum(emb * emb, axis=1, keepdims=True)
    d2 = sq + sq.T - 2.0 * (emb @ emb.T)
    dist = jnp.sqrt(jnp.maximum(d2, 1e-12))
    sim = (label[:, None] == label[None, :]).astype(jnp.float32)
    hard_p = jnp.max(dist - 9999999.0 * (1.0 - sim), axis=1)
    hard_n = jnp.min(dist + 9999999.0 * sim, axis=1)
    loss = jnp.mean(jnp.maximum(hard_p - hard_n + margin, 0.0))
    prec = jnp.mean((hard_n > hard_p).astype(jnp.float32))
    return loss, prec


if __name__ == "__main__":
    margin = 0.3
    key = jax.random.PRNGKey(0)
    k1, k2, k3, k4 = jax.random.split(key, 4)

    # 1) small shape (single-tile path), matches the module's default forward.
    emb_s = jax.random.normal(k1, (8, 32), dtype=jnp.float32)
    lab_s = jax.random.randint(k2, (8,), 0, 4, dtype=jnp.int32)
    loss_s, prec_s = jax.block_until_ready(triplet_loss(emb_s, lab_s, margin=margin))
    ref_ls, ref_ps = _reference(emb_s, lab_s, margin)
    assert jnp.allclose(loss_s, ref_ls, rtol=1e-4, atol=1e-4), (loss_s, ref_ls)
    assert jnp.allclose(prec_s, ref_ps, rtol=1e-4, atol=1e-4), (prec_s, ref_ps)

    emb_t = jax.random.normal(k3, (256, 128), dtype=jnp.float32)
    lab_t = jax.random.randint(k4, (256,), 0, 16, dtype=jnp.int32)
    ref_lt, ref_pt = _reference(emb_t, lab_t, margin)
    n_t = emb_t.shape[0]

    # 2) multi-tile, VMEM-resident candidate (2x2 grid of 128^2 tiles):
    #    exercises the deferred max/min accumulators + in-kernel sublane slices.
    loss_r, prec_r = jax.block_until_ready(
        triplet_loss(emb_t, lab_t, margin=margin, row_tile=128, col_tile=128,
                     resident_candidate=True))
    assert jnp.allclose(loss_r, ref_lt, rtol=1e-4, atol=1e-4), (loss_r, ref_lt)
    # allow at most one (dist_an > dist_ap) flip from matmul accumulation-order
    # rounding when an ~= ap.
    assert jnp.abs(prec_r - ref_pt) <= 1.0 / n_t + 1e-6, (prec_r, ref_pt)

    # 3) same data, streamed-candidate path.
    loss_st, prec_st = jax.block_until_ready(
        triplet_loss(emb_t, lab_t, margin=margin, row_tile=128, col_tile=128,
                     resident_candidate=False))
    assert jnp.allclose(loss_st, ref_lt, rtol=1e-4, atol=1e-4), (loss_st, ref_lt)
    assert jnp.abs(prec_st - ref_pt) <= 1.0 / n_t + 1e-6, (prec_st, ref_pt)

    # 4) bf16 MXU operands (production recommendation): loss shifts by
    #    O(bf16 eps * ||x||^2), so use a loose tolerance and allow a few flips.
    loss_b, prec_b = jax.block_until_ready(
        triplet_loss(emb_t, lab_t, margin=margin, gram_dtype=jnp.bfloat16))
    assert jnp.abs(loss_b - ref_lt) <= 5e-2, (loss_b, ref_lt)
    assert jnp.abs(prec_b - ref_pt) <= 8.0 / n_t + 1e-6, (prec_b, ref_pt)

    print("KERNEL_OK")
</pallas_src>

<mosaic_0001>
module attributes {stable_mosaic.version = 11 : i64} {
  func.func @_mine_kernel(%arg0: i32, %arg1: i32, %arg2: memref<8x32xf32, #tpu.memory_space<vmem>>, %arg3: memref<8x32xf32, #tpu.memory_space<vmem>>, %arg4: memref<8x1xf32, #tpu.memory_space<vmem>>, %arg5: memref<1x8xf32, #tpu.memory_space<vmem>>, %arg6: memref<8x1xi32, #tpu.memory_space<vmem>>, %arg7: memref<1x8xi32, #tpu.memory_space<vmem>>, %arg8: memref<8x1xf32, #tpu.memory_space<vmem>>, %arg9: memref<8x1xf32, #tpu.memory_space<vmem>>, %arg10: memref<8x8xf32, #tpu.memory_space<vmem>>, %arg11: memref<8x8xf32, #tpu.memory_space<vmem>>) attributes {dimension_semantics = [#tpu.dimension_semantics<parallel>, #tpu.dimension_semantics<arbitrary>], iteration_bounds = array<i64: 1, 1>, scalar_prefetch = 0 : i64, scratch_operands = 2 : i64, tpu.core_type = #tpu.core_type<tc>, window_params = [{transform_indices = @transform_0, window_bounds = array<i64: 8, 32>}, {pipeline_mode = #tpu.pipeline_mode<synchronous>, transform_indices = @transform_1, window_bounds = array<i64: 8, 32>}, {transform_indices = @transform_2, window_bounds = array<i64: 8, 1>}, {pipeline_mode = #tpu.pipeline_mode<synchronous>, transform_indices = @transform_3, window_bounds = array<i64: 1, 8>}, {transform_indices = @transform_4, window_bounds = array<i64: 8, 1>}, {pipeline_mode = #tpu.pipeline_mode<synchronous>, transform_indices = @transform_5, window_bounds = array<i64: 1, 8>}, {transform_indices = @transform_6, window_bounds = array<i64: 8, 1>}, {transform_indices = @transform_7, window_bounds = array<i64: 8, 1>}]} {
    %c0_i32 = arith.constant 0 : i32
    %0 = arith.cmpi eq, %arg1, %c0_i32 : i32
    %1 = arith.extui %0 : i1 to i32
    %c0_i32_0 = arith.constant 0 : i32
    %2 = arith.cmpi ne, %1, %c0_i32_0 : i32
    scf.if %2 {
      %cst_19 = arith.constant 0xFF800000 : f32
      %32 = vector.broadcast %cst_19 : f32 to vector<8x8xf32>
      %c0_20 = arith.constant 0 : index
      %c0_21 = arith.constant 0 : index
      %33 = vector.load %arg10[%c0_20, %c0_21] : memref<8x8xf32, #tpu.memory_space<vmem>>, vector<8x8xf32>
      tpu.vector_store %arg10[%c0_20, %c0_21], %32 {strides = array<i32>} : memref<8x8xf32, #tpu.memory_space<vmem>>, vector<8x8xf32>,
      %cst_22 = arith.constant 0x7F800000 : f32
      %34 = vector.broadcast %cst_22 : f32 to vector<8x8xf32>
      %c0_23 = arith.constant 0 : index
      %c0_24 = arith.constant 0 : index
      %35 = vector.load %arg11[%c0_23, %c0_24] : memref<8x8xf32, #tpu.memory_space<vmem>>, vector<8x8xf32>
      tpu.vector_store %arg11[%c0_23, %c0_24], %34 {strides = array<i32>} : memref<8x8xf32, #tpu.memory_space<vmem>>, vector<8x8xf32>,
    } else {
    }
    %c8_i32 = arith.constant 8 : i32
    %3 = arith.muli %arg1, %c8_i32 : i32
    %4 = tpu.assume_multiple %3, 8 : i32
    %5 = arith.index_cast %4 : i32 to index
    %c0 = arith.constant 0 : index
    %6 = vector.load %arg3[%5, %c0] : memref<8x32xf32, #tpu.memory_space<vmem>>, vector<8x32xf32>
    %7 = arith.index_cast %arg1 : i32 to index
    %c0_1 = arith.constant 0 : index
    %8 = vector.load %arg5[%7, %c0_1] : memref<1x8xf32, #tpu.memory_space<vmem>>, vector<1x8xf32>
    %9 = arith.index_cast %arg1 : i32 to index
    %c0_2 = arith.constant 0 : index
    %10 = vector.load %arg7[%9, %c0_2] : memref<1x8xi32, #tpu.memory_space<vmem>>, vector<1x8xi32>
    %c0_3 = arith.constant 0 : index
    %c0_4 = arith.constant 0 : index
    %11 = vector.load %arg2[%c0_3, %c0_4] : memref<8x32xf32, #tpu.memory_space<vmem>>, vector<8x32xf32>
    %cst = arith.constant dense<0.000000e+00> : vector<8x8xf32>
    %12 = tpu.matmul %11, %6, %cst {dimension_numbers = #tpu.dot_dimension_numbers<[1], [1], [0], [0], [0, 0, 1, 0], [], []>} : vector<8x32xf32>, vector<8x32xf32>, vector<8x8xf32> -> vector<8x8xf32>
    %13 = vector.broadcast %8 : vector<1x8xf32> to vector<8x8xf32>
    %14 = arith.subf %13, %12 : vector<8x8xf32>
    %c0_5 = arith.constant 0 : index
    %c0_6 = arith.constant 0 : index
    %15 = vector.load %arg6[%c0_5, %c0_6] : memref<8x1xi32, #tpu.memory_space<vmem>>, vector<8x1xi32>
    %16 = vector.broadcast %15 : vector<8x1xi32> to vector<8x8xi32>
    %17 = vector.broadcast %10 : vector<1x8xi32> to vector<8x8xi32>
    %18 = arith.cmpi eq, %16, %17 : vector<8x8xi32>
    %c0_7 = arith.constant 0 : index
    %c0_8 = arith.constant 0 : index
    %19 = vector.load %arg10[%c0_7, %c0_8] : memref<8x8xf32, #tpu.memory_space<vmem>>, vector<8x8xf32>
    %cst_9 = arith.constant 0xFF800000 : f32
    %20 = vector.broadcast %cst_9 : f32 to vector<8x8xf32>
    %21 = arith.select %18, %14, %20 : vector<8x8xi1>, vector<8x8xf32>
    %22 = arith.maximumf %19, %21 : vector<8x8xf32>
    %c0_10 = arith.constant 0 : index
    %c0_11 = arith.constant 0 : index
    %23 = vector.load %arg10[%c0_10, %c0_11] : memref<8x8xf32, #tpu.memory_space<vmem>>, vector<8x8xf32>
    tpu.vector_store %arg10[%c0_10, %c0_11], %22 {strides = array<i32>} : memref<8x8xf32, #tpu.memory_space<vmem>>, vector<8x8xf32>,
    %c0_12 = arith.constant 0 : index
    %c0_13 = arith.constant 0 : index
    %24 = vector.load %arg11[%c0_12, %c0_13] : memref<8x8xf32, #tpu.memory_space<vmem>>, vector<8x8xf32>
    %cst_14 = arith.constant 0x7F800000 : f32
    %25 = vector.broadcast %cst_14 : f32 to vector<8x8xf32>
    %26 = arith.select %18, %25, %14 : vector<8x8xi1>, vector<8x8xf32>
    %27 = arith.minimumf %24, %26 : vector<8x8xf32>
    %c0_15 = arith.constant 0 : index
    %c0_16 = arith.constant 0 : index
    %28 = vector.load %arg11[%c0_15, %c0_16] : memref<8x8xf32, #tpu.memory_space<vmem>>, vector<8x8xf32>
    tpu.vector_store %arg11[%c0_15, %c0_16], %27 {strides = array<i32>} : memref<8x8xf32, #tpu.memory_space<vmem>>, vector<8x8xf32>,
    %c0_i32_17 = arith.constant 0 : i32
    %29 = arith.cmpi eq, %arg1, %c0_i32_17 : i32
    %30 = arith.extui %29 : i1 to i32
    %c0_i32_18 = arith.constant 0 : i32
    %31 = arith.cmpi ne, %30, %c0_i32_18 : i32
    scf.if %31 {
      %c0_19 = arith.constant 0 : index
      %c0_20 = arith.constant 0 : index
      %32 = vector.load %arg4[%c0_19, %c0_20] : memref<8x1xf32, #tpu.memory_space<vmem>>, vector<8x1xf32>
      %c0_21 = arith.constant 0 : index
      %c0_22 = arith.constant 0 : index
      %33 = vector.load %arg10[%c0_21, %c0_22] : memref<8x8xf32, #tpu.memory_space<vmem>>, vector<8x8xf32>
      %cst_23 = arith.constant dense<0xFF800000> : vector<8xf32>
      %34 = vector.multi_reduction <maximumf>, %33, %cst_23 [1] : vector<8x8xf32> to vector<8xf32>
      %35 = vector.shape_cast %34 : vector<8xf32> to vector<8x1xf32>
      %cst_24 = arith.constant 2.000000e+00 : f32
      %36 = vector.broadcast %cst_24 : f32 to vector<8x1xf32>
      %37 = arith.mulf %36, %35 : vector<8x1xf32>
      %38 = arith.addf %37, %32 : vector<8x1xf32>
      %c0_25 = arith.constant 0 : index
      %c0_26 = arith.constant 0 : index
      %39 = vector.load %arg11[%c0_25, %c0_26] : memref<8x8xf32, #tpu.memory_space<vmem>>, vector<8x8xf32>
      %cst_27 = arith.constant dense<0x7F800000> : vector<8xf32>
      %40 = vector.multi_reduction <minimumf>, %39, %cst_27 [1] : vector<8x8xf32> to vector<8xf32>
      %41 = vector.shape_cast %40 : vector<8xf32> to vector<8x1xf32>
      %cst_28 = arith.constant 2.000000e+00 : f32
      %42 = vector.broadcast %cst_28 : f32 to vector<8x1xf32>
      %43 = arith.mulf %42, %41 : vector<8x1xf32>
      %44 = arith.addf %43, %32 : vector<8x1xf32>
      %cst_29 = arith.constant 9.99999996E-13 : f32
      %45 = vector.broadcast %cst_29 : f32 to vector<8x1xf32>
      %46 = arith.maximumf %38, %45 : vector<8x1xf32>
      %47 = math.sqrt %46 : vector<8x1xf32>
      %c0_30 = arith.constant 0 : index
      %c0_31 = arith.constant 0 : index
      %48 = vector.load %arg8[%c0_30, %c0_31] : memref<8x1xf32, #tpu.memory_space<vmem>>, vector<8x1xf32>
      tpu.vector_store %arg8[%c0_30, %c0_31], %47 {strides = array<i32>} : memref<8x1xf32, #tpu.memory_space<vmem>>, vector<8x1xf32>,
      %cst_32 = arith.constant 9.99999996E-13 : f32
      %49 = vector.broadcast %cst_32 : f32 to vector<8x1xf32>
      %50 = arith.maximumf %44, %49 : vector<8x1xf32>
      %51 = math.sqrt %50 : vector<8x1xf32>
      %c0_33 = arith.constant 0 : index
      %c0_34 = arith.constant 0 : index
      %52 = vector.load %arg9[%c0_33, %c0_34] : memref<8x1xf32, #tpu.memory_space<vmem>>, vector<8x1xf32>
      tpu.vector_store %arg9[%c0_33, %c0_34], %51 {strides = array<i32>} : memref<8x1xf32, #tpu.memory_space<vmem>>, vector<8x1xf32>,
    } else {
    }
    return
  }
  func.func @transform_0(%arg0: i32, %arg1: i32) -> (i32, i32) {
    %c0_i32 = arith.constant 0 : i32
    %c0_i32_0 = arith.constant 0 : i32
    return %arg0, %c0_i32 : i32, i32
  }
  func.func @transform_1(%arg0: i32, %arg1: i32) -> (i32, i32) {
    %c0_i32 = arith.constant 0 : i32
    %c0_i32_0 = arith.constant 0 : i32
    %c0_i32_1 = arith.constant 0 : i32
    return %c0_i32, %c0_i32_0 : i32, i32
  }
  func.func @transform_2(%arg0: i32, %arg1: i32) -> (i32, i32) {
    %c0_i32 = arith.constant 0 : i32
    %c0_i32_0 = arith.constant 0 : i32
    return %arg0, %c0_i32 : i32, i32
  }
  func.func @transform_3(%arg0: i32, %arg1: i32) -> (i32, i32) {
    %c0_i32 = arith.constant 0 : i32
    %c0_i32_0 = arith.constant 0 : i32
    %c0_i32_1 = arith.constant 0 : i32
    return %c0_i32, %c0_i32_0 : i32, i32
  }
  func.func @transform_4(%arg0: i32, %arg1: i32) -> (i32, i32) {
    %c0_i32 = arith.constant 0 : i32
    %c0_i32_0 = arith.constant 0 : i32
    return %arg0, %c0_i32 : i32, i32
  }
  func.func @transform_5(%arg0: i32, %arg1: i32) -> (i32, i32) {
    %c0_i32 = arith.constant 0 : i32
    %c0_i32_0 = arith.constant 0 : i32
    %c0_i32_1 = arith.constant 0 : i32
    return %c0_i32, %c0_i32_0 : i32, i32
  }
  func.func @transform_6(%arg0: i32, %arg1: i32) -> (i32, i32) {
    %c0_i32 = arith.constant 0 : i32
    %c0_i32_0 = arith.constant 0 : i32
    return %arg0, %c0_i32 : i32, i32
  }
  func.func @transform_7(%arg0: i32, %arg1: i32) -> (i32, i32) {
    %c0_i32 = arith.constant 0 : i32
    %c0_i32_0 = arith.constant 0 : i32
    return %arg0, %c0_i32 : i32, i32
  }
}

</mosaic_0001>

<bundles_post_ra>
// kernel: tpu_custom_call.1
= control target key start
LH: loop header
LB: loop body
LE: loop exit
PB: predicated region body
PF: predicated region fallthrough
CT: control target
= control target key end

     0   :  { %vm38_vm0 = vcmask 261120   ;;  %v204_v0 = vmov 0.0   ;;  %vm205_vm1 = vmmov 0   ;;  %v206_v4 = vmov 0   ;;  %s279_s1 = inlined_call_operand.vmem [shape: f32[8,32], index: 1, kind: input, shape index: {}]   ;;  %s280_s0 = inlined_call_operand.vmem [shape: f32[8,32], index: 0, kind: input, shape index: {}]   ;;  %s281_s4 = inlined_call_operand.vmem [shape: s32[8,1], index: 4, kind: input, shape index: {}]   ;;  %s282_s5 = inlined_call_operand.vmem [shape: s32[1,8], index: 5, kind: input, shape index: {}]   ;;  %s283_s3 = inlined_call_operand.vmem [shape: f32[1,8], index: 3, kind: input, shape index: {}]   ;;  %s284_s2 = inlined_call_operand.vmem [shape: f32[8,1], index: 2, kind: input, shape index: {}]   ;;  %s285_s7 = inlined_call_operand.vmem [shape: f32[8,1], index: 7, kind: output, shape index: {1}]   ;;  %s286_s6 = inlined_call_operand.vmem [shape: f32[8,1], index: 6, kind: output, shape index: {0}]  }
   0x1   :  { %189 = vmatprep.subr.mxu0 %v204_v0  ;;  %v34_v1 = vld [vmem:[%s279_s1] sm:$0xff]  ;;  %191 = vmatprep.mubr.msk.f32.mxu0 %vm205_vm1, %v204_v0  ;;  %vm29_vm2 = vcmask 64512   ;;  %v207_v5 = vmov -inf   ;;  %v208_v6 = vmov inf   ;;  %vm164_vm4 = vcmask 7168  }
   0x2   :  { %v122_v2 = vld [vmem:[%s281_s4] sm:$0xff]  ;;  %190 = vmatpush3.xpose.msk.msra.mxu0 %vm38_vm0, %v34_v1  ;;  %199 = vset.pattern.permute.xlu0 %v206_v4  ;;  %30 = vst.msk [vmem:[#allocation2] sm:$0xff] %vm29_vm2, %v207_v5  ;;  %31 = vst.msk [vmem:[#allocation3] sm:$0xff] %vm29_vm2, %v208_v6 }
   0x3   :  { %v37_v3 = vld [vmem:[%s280_s0] sm:$0xff]  ;;  %124 = vperm.xlu0 %199, %v122_v2  }
   0x4   :  { %v186_v7 = vld [vmem:[%s282_s5] ss:$0 sm:$0xff] }
   0x5   :  { %192 = vmatmul.mubr.msk.f32.vlgmr.msra.gmra.mrb[0].mxu0 %vm38_vm0, %v37_v3  ;;  %v185_v9 = vld [vmem:[%s283_s3] ss:$0 sm:$0xff] }
   0x6   :  { %v143_v23 = vld [vmem:[%s284_s2] sm:$0xff] }
   0x9   :  { %v131_v12 = vld [vmem:[#allocation2] sm:$0xff]  ;;  %v136_v13 = vld [vmem:[#allocation3] sm:$0xff] }
  0x82   :  { %v125_v8 = vpop.permute.xlu0 %124 }
  0x83   :  { %vm130_vm3 = vcmp.eq.s32.totalorder %v125_v8, %v186_v7 }
  0xd8   :  { %v111_v10 = vpop.f32.mrb[0].mxu0 }
  0xd9   :  { %v121_v11 = vsub.f32 %v185_v9, %v111_v10  ;;  %v193_v14 = vpop.f32.mrb[1].mxu0 }
  0xdb   :  { %v132_v15 = vsel %vm130_vm3, %v121_v11, -inf  ;;  %v137_v16 = vsel %vm130_vm3, inf, %v121_v11 }
  0xdc   :  { %v133_v17 = vmax.f32 %v131_v12, %v132_v15  ;;  %v138_v18 = vmin.f32 %v136_v13, %v137_v16 }
  0xde   :  { %135 = vst.msk [vmem:[#allocation2] sm:$0xff] %vm29_vm2, %v133_v17  ;;  %139 = vst.msk [vmem:[#allocation3] sm:$0xff] %vm29_vm2, %v138_v18 }
  0xe5   :  { %v150_v19 = vld [vmem:[#allocation3] sm:$0xff]  ;;  %v144_v20 = vld [vmem:[#allocation2] sm:$0xff] }
  0xe6   :  { %v151_v21 = vsel %vm29_vm2, %v150_v19, inf  ;;  %v145_v22 = vsel %vm29_vm2, %v144_v20, -inf }
  0xe7   :  { %152 = vmin.xlane.f32.xlu1 %v151_v21  ;;  %146 = vmax.xlane.f32.xlu0 %v145_v22 }
 0x174   :  { %v153_v24 = vpop.xlane.xlu1 %152  ;;  %v147_v25 = vpop.xlane.xlu0 %146 }
 0x175   :  { %v154_v26 = vmul.f32 2.0, %v153_v24  ;;  %v148_v27 = vmul.f32 2.0, %v147_v25 }
 0x177   :  { %v155_v28 = vadd.f32 %v154_v26, %v143_v23  ;;  %v149_v29 = vadd.f32 %v148_v27, %v143_v23 }
 0x179   :  { %v166_v30 = vmax.f32 %v155_v28, 1e-12  ;;  %v156_v31 = vmax.f32 %v149_v29, 1e-12 }
 0x17b   :  { %200 = vrsqrt.f32 %v166_v30  ;;  %vm169_vm5 = vcmp.eq.f32.partialorder %v166_v30, inf  ;;  %v172_v35 = vand.u32 2147483648, %v166_v30  ;;  %vm171_vm6 = vcmp.eq.f32.partialorder %v166_v30, 0.0 }
 0x17c   :  { %202 = vrsqrt.f32 %v156_v31  ;;  %vm159_vm7 = vcmp.eq.f32.partialorder %v156_v31, inf  ;;  %v162_v38 = vand.u32 2147483648, %v156_v31  ;;  %vm161_vm8 = vcmp.eq.f32.partialorder %v156_v31, 0.0 }
 0x185   :  { %v201_v32 = vpop.eup %200 }
 0x186   :  { %v203_v33 = vpop.eup %202  ;;  %v168_v34 = vmul.f32 %v201_v32, %v166_v30 }
 0x187   :  { %v158_v36 = vmul.f32 %v203_v33, %v156_v31 }
 0x188   :  { %v170_v37 = vsel %vm169_vm5, %v166_v30, %v168_v34 }
 0x189   :  { %v173_v39 = vsel %vm171_vm6, %v172_v35, %v170_v37  ;;  %v160_v40 = vsel %vm159_vm7, %v156_v31, %v158_v36 }
 0x18a   :  { %174 = vst.msk [vmem:[%s285_s7] sm:$0xff] %vm164_vm4, %v173_v39  ;;  %v163_v41 = vsel %vm161_vm8, %v162_v38, %v160_v40 }
 0x18b   :  { %165 = vst.msk [vmem:[%s286_s6] sm:$0xff] %vm164_vm4, %v163_v41 }

</bundles_post_ra>
